<compile_context>
chip_gen: v7x
topology: tpu7x:2x2x1
jax: 0.10.0
libtpu: 0.0.40
codegen_flags: <defaults>
</compile_context>

<pallas_src>
import functools

import jax
import jax.numpy as jnp
from jax.experimental import pallas as pl
from jax.experimental.pallas import tpu as pltpu


def _qnet_kernel(x_ref, w1_ref, b1_ref, w2_ref, b2_ref, w3_ref, b3_ref, o_ref):
    # fc1 + relu : MXU matmul (bf16 or f32 operands) with f32 accumulation;
    # bias-add / ReLU run on the VPU in f32.
    h1 = jnp.dot(x_ref[...], w1_ref[...], preferred_element_type=jnp.float32)
    h1 = jnp.maximum(h1 + b1_ref[...], 0.0)
    # fc2 + relu
    h2 = jnp.dot(h1.astype(w2_ref.dtype), w2_ref[...],
                 preferred_element_type=jnp.float32)
    h2 = jnp.maximum(h2 + b2_ref[...], 0.0)
    # fc3 (no activation)
    h3 = jnp.dot(h2.astype(w3_ref.dtype), w3_ref[...],
                 preferred_element_type=jnp.float32)
    o_ref[...] = (h3 + b3_ref[...]).astype(o_ref.dtype)


@functools.partial(jax.jit, static_argnames=("compute_dtype", "batch_tile"))
def qnet_forward(x, w1, b1, w2, b2, w3, b3, *,
                 compute_dtype=jnp.bfloat16, batch_tile=256):
    """x: [B, input_size]. Weights W_i: (in, out); biases b_i: (out,)."""
    B, d_in = x.shape
    d_h1 = w1.shape[1]          # 128
    d_h2 = w2.shape[1]          # hidden_size
    d_out = w3.shape[1]         # output_size

    # One cheap cast at the kernel boundary (no zero-padding, no copies of
    # padded slabs). Biases stay f32 for the f32 epilogue.
    xc = x.astype(compute_dtype)
    w1c = w1.astype(compute_dtype)
    w2c = w2.astype(compute_dtype)
    w3c = w3.astype(compute_dtype)
    b1r = b1.reshape(1, d_h1).astype(jnp.float32)
    b2r = b2.reshape(1, d_h2).astype(jnp.float32)
    b3r = b3.reshape(1, d_out).astype(jnp.float32)

    # Batch tiling: a single full-batch block when B is small (full-array
    # blocks are always legal); otherwise a fixed tile (multiple of 8) so the
    # x/out DMAs pipeline and VMEM/vreg pressure stays bounded.
    tb = B if B <= batch_tile else batch_tile
    grid = (pl.cdiv(B, tb),)

    const2 = lambda i: (0, 0)   # weights/biases: same block every iteration
    in_specs = [
        pl.BlockSpec((tb, d_in), lambda i: (i, 0)),
        pl.BlockSpec((d_in, d_h1), const2),
        pl.BlockSpec((1, d_h1), const2),
        pl.BlockSpec((d_h1, d_h2), const2),
        pl.BlockSpec((1, d_h2), const2),
        pl.BlockSpec((d_h2, d_out), const2),
        pl.BlockSpec((1, d_out), const2),
    ]
    out_specs = pl.BlockSpec((tb, d_out), lambda i: (i, 0))

    flops = 2 * B * (d_in * d_h1 + d_h1 * d_h2 + d_h2 * d_out)
    bytes_accessed = int(
        xc.size * xc.dtype.itemsize
        + sum(a.size * a.dtype.itemsize for a in (w1c, w2c, w3c, b1r, b2r, b3r))
        + B * d_out * 4
    )

    return pl.pallas_call(
        _qnet_kernel,
        out_shape=jax.ShapeDtypeStruct((B, d_out), jnp.float32),
        grid_spec=pltpu.PrefetchScalarGridSpec(
            num_scalar_prefetch=0,
            grid=grid,
            in_specs=in_specs,
            out_specs=out_specs,
        ),
        compiler_params=pltpu.CompilerParams(
            dimension_semantics=("parallel",),
        ),
        cost_estimate=pl.CostEstimate(
            flops=flops, transcendentals=0, bytes_accessed=bytes_accessed),
    )(xc, w1c, b1r, w2c, b2r, w3c, b3r)


def init_qnet_params(key, input_size, hidden_size, output_size):
    """Deterministic init matching nn.Linear shapes (stored transposed: (in, out))."""
    ks = jax.random.split(key, 6)

    def linear_init(kw, kb, fan_in, fan_out):
        bound = 1.0 / jnp.sqrt(jnp.float32(fan_in))
        w = jax.random.uniform(kw, (fan_in, fan_out), jnp.float32, -bound, bound)
        b = jax.random.uniform(kb, (fan_out,), jnp.float32, -bound, bound)
        return w, b

    w1, b1 = linear_init(ks[0], ks[1], input_size, 128)
    w2, b2 = linear_init(ks[2], ks[3], 128, hidden_size)
    w3, b3 = linear_init(ks[4], ks[5], hidden_size, output_size)
    return w1, b1, w2, b2, w3, b3


if __name__ == "__main__":
    input_size, hidden_size, output_size = 4, 32, 2   # typical DQN (e.g. CartPole)
    batch = 8

    key = jax.random.PRNGKey(0)
    kx, kp = jax.random.split(key)
    x = jax.random.normal(kx, (batch, input_size), jnp.float32)
    params = init_qnet_params(kp, input_size, hidden_size, output_size)
    w1, b1, w2, b2, w3, b3 = params

    # Default (bf16-matmul / f32-accumulate) path.
    out = jax.block_until_ready(qnet_forward(x, *params))
    assert out.shape == (batch, output_size)

    # Reference with identical bf16-matmul / f32-accumulate semantics.
    cd = jnp.bfloat16
    h = jnp.maximum(jnp.dot(x.astype(cd), w1.astype(cd),
                            preferred_element_type=jnp.float32) + b1, 0.0)
    h = jnp.maximum(jnp.dot(h.astype(cd), w2.astype(cd),
                            preferred_element_type=jnp.float32) + b2, 0.0)
    ref_bf16 = jnp.dot(h.astype(cd), w3.astype(cd),
                       preferred_element_type=jnp.float32) + b3
    assert jnp.allclose(out, ref_bf16, atol=1e-3, rtol=1e-3), \
        float(jnp.max(jnp.abs(out - ref_bf16)))

    # Full-f32 PyTorch-equivalent reference.
    hf = jnp.maximum(x @ w1 + b1, 0.0)
    hf = jnp.maximum(hf @ w2 + b2, 0.0)
    ref_f32 = hf @ w3 + b3

    # bf16 path should be close to the f32 module output.
    assert jnp.allclose(out, ref_f32, atol=2e-1, rtol=2e-1)

    # f32 compute path should match the module output tightly.
    out_f32 = jax.block_until_ready(
        qnet_forward(x, *params, compute_dtype=jnp.float32))
    assert jnp.allclose(out_f32, ref_f32, atol=1e-5, rtol=1e-5), \
        float(jnp.max(jnp.abs(out_f32 - ref_f32)))

    print("KERNEL_OK")
</pallas_src>

<mosaic_0001>
module attributes {stable_mosaic.version = 11 : i64} {
  func.func @_qnet_kernel(%arg0: i32, %arg1: memref<8x4xbf16, #tpu.memory_space<vmem>>, %arg2: memref<4x128xbf16, #tpu.memory_space<vmem>>, %arg3: memref<1x128xf32, #tpu.memory_space<vmem>>, %arg4: memref<128x32xbf16, #tpu.memory_space<vmem>>, %arg5: memref<1x32xf32, #tpu.memory_space<vmem>>, %arg6: memref<32x2xbf16, #tpu.memory_space<vmem>>, %arg7: memref<1x2xf32, #tpu.memory_space<vmem>>, %arg8: memref<8x2xf32, #tpu.memory_space<vmem>>) attributes {dimension_semantics = [#tpu.dimension_semantics<parallel>], iteration_bounds = array<i64: 1>, scalar_prefetch = 0 : i64, scratch_operands = 0 : i64, tpu.core_type = #tpu.core_type<tc>, window_params = [{transform_indices = @transform_0, window_bounds = array<i64: 8, 4>}, {pipeline_mode = #tpu.pipeline_mode<synchronous>, transform_indices = @transform_1, window_bounds = array<i64: 4, 128>}, {pipeline_mode = #tpu.pipeline_mode<synchronous>, transform_indices = @transform_2, window_bounds = array<i64: 1, 128>}, {pipeline_mode = #tpu.pipeline_mode<synchronous>, transform_indices = @transform_3, window_bounds = array<i64: 128, 32>}, {pipeline_mode = #tpu.pipeline_mode<synchronous>, transform_indices = @transform_4, window_bounds = array<i64: 1, 32>}, {pipeline_mode = #tpu.pipeline_mode<synchronous>, transform_indices = @transform_5, window_bounds = array<i64: 32, 2>}, {pipeline_mode = #tpu.pipeline_mode<synchronous>, transform_indices = @transform_6, window_bounds = array<i64: 1, 2>}, {transform_indices = @transform_7, window_bounds = array<i64: 8, 2>}]} {
    %c0 = arith.constant 0 : index
    %c0_0 = arith.constant 0 : index
    %0 = vector.load %arg1[%c0, %c0_0] : memref<8x4xbf16, #tpu.memory_space<vmem>>, vector<8x4xbf16>
    %c0_1 = arith.constant 0 : index
    %c0_2 = arith.constant 0 : index
    %1 = vector.load %arg2[%c0_1, %c0_2] : memref<4x128xbf16, #tpu.memory_space<vmem>>, vector<4x128xbf16>
    %cst = arith.constant dense<0.000000e+00> : vector<8x128xf32>
    %2 = tpu.matmul %0, %1, %cst {dimension_numbers = #tpu.dot_dimension_numbers<[1], [0], [0], [1], [0, 0, 1, 1], [], []>} : vector<8x4xbf16>, vector<4x128xbf16>, vector<8x128xf32> -> vector<8x128xf32>
    %c0_3 = arith.constant 0 : index
    %c0_4 = arith.constant 0 : index
    %3 = vector.load %arg3[%c0_3, %c0_4] : memref<1x128xf32, #tpu.memory_space<vmem>>, vector<1x128xf32>
    %4 = vector.broadcast %3 : vector<1x128xf32> to vector<8x128xf32>
    %5 = arith.addf %2, %4 : vector<8x128xf32>
    %cst_5 = arith.constant 0.000000e+00 : f32
    %6 = vector.broadcast %cst_5 : f32 to vector<8x128xf32>
    %7 = arith.maximumf %5, %6 : vector<8x128xf32>
    %8 = arith.truncf %7 : vector<8x128xf32> to vector<8x128xbf16>
    %c0_6 = arith.constant 0 : index
    %c0_7 = arith.constant 0 : index
    %9 = vector.load %arg4[%c0_6, %c0_7] : memref<128x32xbf16, #tpu.memory_space<vmem>>, vector<128x32xbf16>
    %cst_8 = arith.constant dense<0.000000e+00> : vector<8x32xf32>
    %10 = tpu.matmul %8, %9, %cst_8 {dimension_numbers = #tpu.dot_dimension_numbers<[1], [0], [0], [1], [0, 0, 1, 1], [], []>} : vector<8x128xbf16>, vector<128x32xbf16>, vector<8x32xf32> -> vector<8x32xf32>
    %c0_9 = arith.constant 0 : index
    %c0_10 = arith.constant 0 : index
    %11 = vector.load %arg5[%c0_9, %c0_10] : memref<1x32xf32, #tpu.memory_space<vmem>>, vector<1x32xf32>
    %12 = vector.broadcast %11 : vector<1x32xf32> to vector<8x32xf32>
    %13 = arith.addf %10, %12 : vector<8x32xf32>
    %cst_11 = arith.constant 0.000000e+00 : f32
    %14 = vector.broadcast %cst_11 : f32 to vector<8x32xf32>
    %15 = arith.maximumf %13, %14 : vector<8x32xf32>
    %16 = arith.truncf %15 : vector<8x32xf32> to vector<8x32xbf16>
    %c0_12 = arith.constant 0 : index
    %c0_13 = arith.constant 0 : index
    %17 = vector.load %arg6[%c0_12, %c0_13] : memref<32x2xbf16, #tpu.memory_space<vmem>>, vector<32x2xbf16>
    %cst_14 = arith.constant dense<0.000000e+00> : vector<8x2xf32>
    %18 = tpu.matmul %16, %17, %cst_14 {dimension_numbers = #tpu.dot_dimension_numbers<[1], [0], [0], [1], [0, 0, 1, 1], [], []>} : vector<8x32xbf16>, vector<32x2xbf16>, vector<8x2xf32> -> vector<8x2xf32>
    %c0_15 = arith.constant 0 : index
    %c0_16 = arith.constant 0 : index
    %19 = vector.load %arg7[%c0_15, %c0_16] : memref<1x2xf32, #tpu.memory_space<vmem>>, vector<1x2xf32>
    %20 = vector.broadcast %19 : vector<1x2xf32> to vector<8x2xf32>
    %21 = arith.addf %18, %20 : vector<8x2xf32>
    %c0_17 = arith.constant 0 : index
    %c0_18 = arith.constant 0 : index
    %22 = vector.load %arg8[%c0_17, %c0_18] : memref<8x2xf32, #tpu.memory_space<vmem>>, vector<8x2xf32>
    tpu.vector_store %arg8[%c0_17, %c0_18], %21 {strides = array<i32>} : memref<8x2xf32, #tpu.memory_space<vmem>>, vector<8x2xf32>,
    return
  }
  func.func @transform_0(%arg0: i32) -> (i32, i32) {
    %c0_i32 = arith.constant 0 : i32
    %c0_i32_0 = arith.constant 0 : i32
    return %arg0, %c0_i32 : i32, i32
  }
  func.func @transform_1(%arg0: i32) -> (i32, i32) {
    %c0_i32 = arith.constant 0 : i32
    %c0_i32_0 = arith.constant 0 : i32
    %c0_i32_1 = arith.constant 0 : i32
    return %c0_i32, %c0_i32_0 : i32, i32
  }
  func.func @transform_2(%arg0: i32) -> (i32, i32) {
    %c0_i32 = arith.constant 0 : i32
    %c0_i32_0 = arith.constant 0 : i32
    %c0_i32_1 = arith.constant 0 : i32
    return %c0_i32, %c0_i32_0 : i32, i32
  }
  func.func @transform_3(%arg0: i32) -> (i32, i32) {
    %c0_i32 = arith.constant 0 : i32
    %c0_i32_0 = arith.constant 0 : i32
    %c0_i32_1 = arith.constant 0 : i32
    return %c0_i32, %c0_i32_0 : i32, i32
  }
  func.func @transform_4(%arg0: i32) -> (i32, i32) {
    %c0_i32 = arith.constant 0 : i32
    %c0_i32_0 = arith.constant 0 : i32
    %c0_i32_1 = arith.constant 0 : i32
    return %c0_i32, %c0_i32_0 : i32, i32
  }
  func.func @transform_5(%arg0: i32) -> (i32, i32) {
    %c0_i32 = arith.constant 0 : i32
    %c0_i32_0 = arith.constant 0 : i32
    %c0_i32_1 = arith.constant 0 : i32
    return %c0_i32, %c0_i32_0 : i32, i32
  }
  func.func @transform_6(%arg0: i32) -> (i32, i32) {
    %c0_i32 = arith.constant 0 : i32
    %c0_i32_0 = arith.constant 0 : i32
    %c0_i32_1 = arith.constant 0 : i32
    return %c0_i32, %c0_i32_0 : i32, i32
  }
  func.func @transform_7(%arg0: i32) -> (i32, i32) {
    %c0_i32 = arith.constant 0 : i32
    %c0_i32_0 = arith.constant 0 : i32
    return %arg0, %c0_i32 : i32, i32
  }
}

</mosaic_0001>

<bundles_post_ra>
// kernel: qnet_forward.1
= control target key start
LH: loop header
LB: loop body
LE: loop exit
PB: predicated region body
PF: predicated region fallthrough
CT: control target
= control target key end

     0   :  { %vm40_vm0 = vcmask 1041408   ;;  %v347_v0 = vmov 0.0   ;;  %vm348_vm1 = vmmov 0   ;;  %vm36_vm2 = vcmask 31744   ;;  %s437_s1 = inlined_call_operand.vmem [shape: bf16[4,128], index: 1, kind: input, shape index: {}]   ;;  %s438_s0 = inlined_call_operand.vmem [shape: bf16[8,4], index: 0, kind: input, shape index: {}]   ;;  %s439_s3 = inlined_call_operand.vmem [shape: bf16[128,32], index: 3, kind: input, shape index: {}]   ;;  %s440_s5 = inlined_call_operand.vmem [shape: bf16[32,2], index: 5, kind: input, shape index: {}]   ;;  %s441_s2 = inlined_call_operand.vmem [shape: f32[1,128], index: 2, kind: input, shape index: {}]   ;;  %s442_s4 = inlined_call_operand.vmem [shape: f32[1,32], index: 4, kind: input, shape index: {}]   ;;  %s443_s6 = inlined_call_operand.vmem [shape: f32[1,2], index: 6, kind: input, shape index: {}]   ;;  %s444_s7 = inlined_call_operand.vmem [shape: f32[8,2], index: 7, kind: output, shape index: {}]  }
   0x1   :  { %301 = vmatprep.subr.bf16.mxu0 %v347_v0  ;;  %v28_v1 = vld [vmem:[%s437_s1] sm:$0x3]  ;;  %303 = vmatprep.mubr.msk.bf16.mxu0 %vm348_vm1, %v347_v0  ;;  %v338_v5 = vld [vmem:[%s439_s3 + $0x8] sm:$0xff]   ;;  %v339_v6 = vld [vmem:[%s439_s3 + $0x10] sm:$0xff]   ;;  %vm222_vm3 = vcmask 261120   ;;  %vm266_vm4 = vcmask 15360  }
   0x2   :  { %v42_v2 = vsel %vm40_vm0, %v28_v1, 0  ;;  %307 = vmatprep.subr.bf16.mxu1 %v347_v0  ;;  %v337_v3 = vld [vmem:[%s439_s3] sm:$0xff]   ;;  %323 = vmatprep.mubr.msk.bf16.mxu1 %vm348_vm1, %v347_v0  ;;  %v340_v7 = vld [vmem:[%s439_s3 + $0x18] sm:$0xff]   ;;  %v342_v9 = vld [vmem:[%s439_s3 + $0x28] sm:$0xff]  }
   0x3   :  { %302 = vmatpush3.bf16.msra.mxu0 %v42_v2  ;;  %v27_v4 = vld [vmem:[%s438_s0] sm:$0xf]  ;;  %308 = vmatpush3.bf16.msra.mxu1 %v337_v3  ;;  %v343_v10 = vld [vmem:[%s439_s3 + $0x30] sm:$0xff]   ;;  %v344_v11 = vld [vmem:[%s439_s3 + $0x38] sm:$0xff]  }
   0x4   :  { %327 = vmatprep.subr.bf16.mxu0 %v347_v0  ;;  %309 = vmatprep.subr.bf16.mxu1 %v347_v0  ;;  %v341_v8 = vld [vmem:[%s439_s3 + $0x20] sm:$0xff]   ;;  %v346_v21 = vld [vmem:[%s440_s5 + $0x8] sm:$0xff]  }
   0x5   :  { %v345_v12 = vld [vmem:[%s440_s5] sm:$0xff]  }
   0x6   :  { %304 = vmatmul.mubr.msk.bf16.vlgmr.msra.gmra.mrb[0].mxu0 %vm36_vm2, %v27_v4  ;;  %v272_v13 = vld [vmem:[%s441_s2] ss:$0 sm:$0xff] }
   0x7   :  { %331 = vmatprep.mubr.msk.bf16.mxu0 %vm348_vm1, %v347_v0  ;;  %310 = vmatpush3.bf16.msra.mxu1 %v338_v5  ;;  %v274_v22 = vld [vmem:[%s442_s4] ss:$0 sm:$0xff] }
   0x8   :  { %311 = vmatprep.subr.bf16.mxu1 %v347_v0  ;;  %328 = vmatpush3.bf16.msra.mxu0 %v345_v12  ;;  %v283_v30 = vld [vmem:[%s443_s6] ss:$0 sm:$0xff] }
   0x9   :  { %329 = vmatprep.subr.bf16.mxu0 %v347_v0 }
   0xb   :  { %312 = vmatpush3.bf16.msra.mxu1 %v339_v6 }
   0xc   :  { %313 = vmatprep.subr.bf16.mxu1 %v347_v0  ;;  %330 = vmatpush3.bf16.msra.mxu0 %v346_v21 }
   0xf   :  { %314 = vmatpush3.bf16.msra.mxu1 %v340_v7 }
  0x10   :  { %315 = vmatprep.subr.bf16.mxu1 %v347_v0 }
  0x13   :  { %316 = vmatpush3.bf16.msra.mxu1 %v341_v8 }
  0x14   :  { %317 = vmatprep.subr.bf16.mxu1 %v347_v0 }
  0x17   :  { %318 = vmatpush3.bf16.msra.mxu1 %v342_v9 }
  0x18   :  { %319 = vmatprep.subr.bf16.mxu1 %v347_v0 }
  0x1b   :  { %320 = vmatpush3.bf16.msra.mxu1 %v343_v10 }
  0x1c   :  { %321 = vmatprep.subr.bf16.mxu1 %v347_v0 }
  0x1f   :  { %322 = vmatpush3.bf16.msra.mxu1 %v344_v11 }
  0xd9   :  { %v78_v14 = vpop.f32.mrb[0].mxu0 }
  0xda   :  { %v79_v15 = vadd.f32 %v272_v13, %v78_v14  ;;  %v305_v16 = vpop.f32.mrb[1].mxu0 }
  0xdb   :  { %v81_v17 = vpop.f32.mrb[2].mxu0 }
  0xdc   :  { %v84_v18 = vmax.f32 %v79_v15, 0.0  ;;  %v306_v19 = vpop.f32.mrb[3].mxu0 }
  0xde   :  { %v85_v20 = vpack.c.bf16 %v84_v18, %v84_v18 }
  0xe0   :  { %324 = vmatmul.mubr.bf16.vlgmr.msra.gmra.mrb[0].mxu1 %v85_v20 }
 0x1b3   :  { %v191_v23 = vpop.f32.mrb[0].mxu1 }
 0x1b4   :  { %v192_v24 = vadd.f32 %v274_v22, %v191_v23  ;;  %v325_v25 = vpop.f32.mrb[1].mxu1 }
 0x1b5   :  { %v194_v26 = vpop.f32.mrb[2].mxu1 }
 0x1b6   :  { %v197_v27 = vmax.f32 %v192_v24, 0.0  ;;  %v326_v28 = vpop.f32.mrb[3].mxu1 }
 0x1b8   :  { %v198_v29 = vpack.c.bf16 %v197_v27, %v197_v27 }
 0x1ba   :  { %332 = vmatmul.mubr.msk.bf16.vlgmr.msra.gmra.mrb[4].mxu0 %vm222_vm3, %v198_v29 }
 0x28d   :  { %v260_v31 = vpop.f32.mrb[4].mxu0 }
 0x28e   :  { %v261_v32 = vadd.f32 %v283_v30, %v260_v31  ;;  %v333_v33 = vpop.f32.mrb[5].mxu0 }
 0x28f   :  { %v263_v34 = vpop.f32.mrb[6].mxu0 }
 0x290   :  { %267 = vst.msk [vmem:[%s444_s7] sm:$0xff] %vm266_vm4, %v261_v32  ;;  %v334_v35 = vpop.f32.mrb[7].mxu0 }

</bundles_post_ra>
